<compile_context>
chip_gen: v6e
topology: v6e:2x2x1
jax: 0.10.0
libtpu: 0.0.40
codegen_flags: <defaults>
</compile_context>

<pallas_src>
import jax
import jax.numpy as jnp
from jax.experimental import pallas as pl
from jax.experimental.pallas import tpu as pltpu


def _hyper_linear_kernel(z_ref, w_ref, b_ref, s_ref, x_ref, px_ref, out_ref):
    """One B-tile of the fused HyperLinear forward.

    z_ref  : (TB, N)        noise (streamed)
    w_ref  : (N, 2*A*D)     A-replicated, pre-scaled, pre-transposed weights (resident)
    b_ref  : (1, 2*A*D)     A-replicated, pre-scaled biases (resident)
    s_ref  : (A*D, A)       constant 0/1 segment-sum matrix (resident)
    x_ref  : (TB, A*D)      posterior features, lane-dense (streamed)
    px_ref : (TB, A*D)      prior features, lane-dense (streamed)
    out_ref: (TB, A)
    """
    AD = x_ref.shape[-1]
    # Single MXU matmul emits BOTH thetas, already broadcast over the A
    # positions (no sublane/XLU broadcast in the kernel).
    thetas = jnp.dot(z_ref[...], w_ref[...],
                     preferred_element_type=jnp.float32) + b_ref[...]
    theta_exp = thetas[:, :AD]       # posterior_scale * theta, replicated over A
    prior_exp = thetas[:, AD:]       # prior_scale * prior_theta, replicated over A
    # Pure VPU work: 2 multiplies + 1 add per streamed element.
    prod = (theta_exp * x_ref[...].astype(jnp.float32)
            + prior_exp * px_ref[...].astype(jnp.float32))       # (TB, A*D)
    # Segmented reduction over D via the MXU (constant 0/1 matrix) instead of
    # an XLU cross-lane reduce per (b, a).
    out_ref[...] = jnp.dot(prod, s_ref[...],
                           preferred_element_type=jnp.float32)   # (TB, A)


def hyper_linear_forward(z, wh, bh, wp, bp, x, prior_x, *,
                         posterior_scale=1.0, prior_scale=1.0,
                         block_b=2048, stream_dtype=None):
    B, N = z.shape
    _, A, D = x.shape
    AD = A * D
    assert x.shape == (B, A, D) and prior_x.shape == (B, A, D)
    assert wh.shape == (D, N) and wp.shape == (D, N)

    # ---- Wrapper-side packing (tiny, done once per call) --------------------
    # A-replicated, pre-scaled, pre-transposed weights: W_exp[n, a*D+d] = s*W[d, n]
    wh_rep = jnp.tile((posterior_scale * wh).T, (1, A))          # (N, A*D)
    wp_rep = jnp.tile((prior_scale * wp).T, (1, A))              # (N, A*D)
    w_exp = jnp.concatenate([wh_rep, wp_rep], axis=1).astype(jnp.float32)  # (N, 2AD)

    bh_rep = jnp.tile(posterior_scale * jnp.reshape(bh, (1, D)), (1, A))
    bp_rep = jnp.tile(prior_scale * jnp.reshape(bp, (1, D)), (1, A))
    b_exp = jnp.concatenate([bh_rep, bp_rep], axis=1).astype(jnp.float32)  # (1, 2AD)

    # Segment-sum matrix: S[a*D + d, a] = 1.
    seg = jnp.repeat(jnp.eye(A, dtype=jnp.float32), D, axis=0)             # (AD, A)

    # Lane-dense streamed features (free contiguous reshape).
    x_flat = jnp.reshape(x, (B, AD))
    px_flat = jnp.reshape(prior_x, (B, AD))
    if stream_dtype is not None:
        x_flat = x_flat.astype(stream_dtype)
        px_flat = px_flat.astype(stream_dtype)

    # ---- B tiling (ragged B handled via zero-padding) -----------------------
    if B <= block_b:
        tb = B
    else:
        tb = max(8, (block_b // 8) * 8)
    nb = -(-B // tb)
    B_pad = nb * tb
    if B_pad != B:
        pad = B_pad - B
        z = jnp.pad(z, ((0, pad), (0, 0)))
        x_flat = jnp.pad(x_flat, ((0, pad), (0, 0)))
        px_flat = jnp.pad(px_flat, ((0, pad), (0, 0)))

    grid_spec = pltpu.PrefetchScalarGridSpec(
        num_scalar_prefetch=0,
        grid=(nb,),
        in_specs=[
            pl.BlockSpec((tb, N), lambda i: (i, 0)),          # z        (streamed)
            pl.BlockSpec((N, 2 * AD), lambda i: (0, 0)),      # weights  (resident)
            pl.BlockSpec((1, 2 * AD), lambda i: (0, 0)),      # biases   (resident)
            pl.BlockSpec((AD, A), lambda i: (0, 0)),          # segment  (resident)
            pl.BlockSpec((tb, AD), lambda i: (i, 0)),         # x        (streamed)
            pl.BlockSpec((tb, AD), lambda i: (i, 0)),         # prior_x  (streamed)
        ],
        out_specs=pl.BlockSpec((tb, A), lambda i: (i, 0)),
    )

    # VMEM budget (double-buffered streamed tiles + in-kernel intermediates).
    def _lanes(n):
        return -(-n // 128) * 128
    elt = 2 if stream_dtype == jnp.bfloat16 else 4
    per_row = (2 * (4 * _lanes(N) + 2 * elt * _lanes(AD) + 4 * _lanes(A))
               + 4 * _lanes(2 * AD) + 4 * _lanes(AD))
    resident = 4 * (N * _lanes(2 * AD) + _lanes(2 * AD) + AD * _lanes(A))
    vmem_est = tb * per_row + resident
    vmem_limit = int(min(max(int(vmem_est * 1.5), 32 * 1024 * 1024),
                         64 * 1024 * 1024))

    # Memory-bound: dominated by streaming x / prior_x once each.
    bytes_accessed = (elt * 2 * B * AD
                      + 4 * (B * N + B * A + N * 2 * AD + 2 * AD + AD * A))
    flops = 2 * B * N * (2 * AD) + 3 * B * AD + 2 * B * AD * A
    cost = pl.CostEstimate(flops=flops, transcendentals=0,
                           bytes_accessed=bytes_accessed)

    out = pl.pallas_call(
        _hyper_linear_kernel,
        out_shape=jax.ShapeDtypeStruct((B_pad, A), jnp.float32),
        grid_spec=grid_spec,
        compiler_params=pltpu.CompilerParams(
            dimension_semantics=("parallel",),   # shard B over v7x's 2 TCs
            vmem_limit_bytes=vmem_limit,
        ),
        cost_estimate=cost,
    )(z, w_exp, b_exp, seg, x_flat, px_flat)

    return out[:B] if B_pad != B else out


def init_params(key, noise_dim, out_features, prior_std=1.0):
    """Distribution-matching init (shapes from HyperLayer.__init__, out_type='weight')."""
    k_wh, k_bh, k_wp, k_bp = jax.random.split(key, 4)
    D, N = out_features, noise_dim
    # hyper_weight: xavier_normal -> (D, N)
    xavier_std = jnp.sqrt(2.0 / (N + D))
    wh = xavier_std * jax.random.normal(k_wh, (D, N), dtype=jnp.float32)
    # bias_init 'sphere-sphere', out_type 'weight' -> 'sphere': unit-norm gaussian * prior_std
    bh = jax.random.normal(k_bh, (D,), dtype=jnp.float32)
    bh = prior_std * bh / jnp.linalg.norm(bh)
    # prior_weight: 'sDB' -> per-row unit-norm gaussian * prior_std
    wp = jax.random.normal(k_wp, (D, N), dtype=jnp.float32)
    wp = prior_std * wp / jnp.linalg.norm(wp, axis=1, keepdims=True)
    bp = jax.random.normal(k_bp, (D,), dtype=jnp.float32)
    bp = prior_std * bp / jnp.linalg.norm(bp)
    return wh, bh.reshape(1, D), wp, bp.reshape(1, D)


def reference_forward(z, wh, bh, wp, bp, x, prior_x,
                      *, posterior_scale=1.0, prior_scale=1.0):
    theta = z @ wh.T + bh
    prior_theta = z @ wp.T + bp
    out = jnp.einsum('bd,bad->ba', theta, x)
    prior_out = jnp.einsum('bd,bad->ba', prior_theta, prior_x)
    return posterior_scale * out + prior_scale * prior_out


if __name__ == "__main__":
    noise_dim, out_features, A = 8, 32, 8
    prior_std = 1.0

    key = jax.random.PRNGKey(0)
    (k_params, k_z, k_x, k_px,
     k_z2, k_x2, k_px2, k_z3, k_x3, k_px3) = jax.random.split(key, 10)
    wh, bh, wp, bp = init_params(k_params, noise_dim, out_features, prior_std)

    # --- Test 1: tiny batch (B=2), single grid step -------------------------
    B = 2
    z = jax.random.normal(k_z, (B, noise_dim), dtype=jnp.float32)
    x = jax.random.normal(k_x, (B, A, out_features), dtype=jnp.float32)
    prior_x = jax.random.normal(k_px, (B, A, out_features), dtype=jnp.float32)

    out = hyper_linear_forward(z, wh, bh, wp, bp, x, prior_x,
                               posterior_scale=1.0, prior_scale=1.0)
    out = jax.block_until_ready(out)
    ref = reference_forward(z, wh, bh, wp, bp, x, prior_x,
                            posterior_scale=1.0, prior_scale=1.0)
    assert out.shape == (B, A)
    assert jnp.allclose(out, ref, atol=1e-4, rtol=1e-4), "mismatch vs reference (B=2)"

    # --- Test 2: multi-block grid (B=24, TB=8 -> 3 steps) + scales ----------
    B2 = 24
    z2 = jax.random.normal(k_z2, (B2, noise_dim), dtype=jnp.float32)
    x2 = jax.random.normal(k_x2, (B2, A, out_features), dtype=jnp.float32)
    px2 = jax.random.normal(k_px2, (B2, A, out_features), dtype=jnp.float32)

    out2 = hyper_linear_forward(z2, wh, bh, wp, bp, x2, px2,
                                posterior_scale=0.7, prior_scale=1.3,
                                block_b=8)
    out2 = jax.block_until_ready(out2)
    ref2 = reference_forward(z2, wh, bh, wp, bp, x2, px2,
                             posterior_scale=0.7, prior_scale=1.3)
    assert out2.shape == (B2, A)
    assert jnp.allclose(out2, ref2, atol=1e-4, rtol=1e-4), "mismatch vs reference (B=24)"

    # --- Test 3: ragged batch (B=20, TB=8 -> pad to 24, slice back) ---------
    B3 = 20
    z3 = jax.random.normal(k_z3, (B3, noise_dim), dtype=jnp.float32)
    x3 = jax.random.normal(k_x3, (B3, A, out_features), dtype=jnp.float32)
    px3 = jax.random.normal(k_px3, (B3, A, out_features), dtype=jnp.float32)

    out3 = hyper_linear_forward(z3, wh, bh, wp, bp, x3, px3,
                                posterior_scale=1.1, prior_scale=0.5,
                                block_b=8)
    out3 = jax.block_until_ready(out3)
    ref3 = reference_forward(z3, wh, bh, wp, bp, x3, px3,
                             posterior_scale=1.1, prior_scale=0.5)
    assert out3.shape == (B3, A)
    assert jnp.allclose(out3, ref3, atol=1e-4, rtol=1e-4), "mismatch vs reference (B=20 ragged)"

    print("KERNEL_OK")
</pallas_src>

<mosaic_0001>
module attributes {stable_mosaic.version = 11 : i64} {
  func.func @_hyper_linear_kernel(%arg0: i32, %arg1: memref<2x8xf32, #tpu.memory_space<vmem>>, %arg2: memref<8x512xf32, #tpu.memory_space<vmem>>, %arg3: memref<1x512xf32, #tpu.memory_space<vmem>>, %arg4: memref<256x8xf32, #tpu.memory_space<vmem>>, %arg5: memref<2x256xf32, #tpu.memory_space<vmem>>, %arg6: memref<2x256xf32, #tpu.memory_space<vmem>>, %arg7: memref<2x8xf32, #tpu.memory_space<vmem>>) attributes {dimension_semantics = [#tpu.dimension_semantics<parallel>], iteration_bounds = array<i64: 1>, scalar_prefetch = 0 : i64, scratch_operands = 0 : i64, tpu.core_type = #tpu.core_type<tc>, window_params = [{transform_indices = @transform_0, window_bounds = array<i64: 2, 8>}, {pipeline_mode = #tpu.pipeline_mode<synchronous>, transform_indices = @transform_1, window_bounds = array<i64: 8, 512>}, {pipeline_mode = #tpu.pipeline_mode<synchronous>, transform_indices = @transform_2, window_bounds = array<i64: 1, 512>}, {pipeline_mode = #tpu.pipeline_mode<synchronous>, transform_indices = @transform_3, window_bounds = array<i64: 256, 8>}, {transform_indices = @transform_4, window_bounds = array<i64: 2, 256>}, {transform_indices = @transform_5, window_bounds = array<i64: 2, 256>}, {transform_indices = @transform_6, window_bounds = array<i64: 2, 8>}]} {
    %c0 = arith.constant 0 : index
    %c0_0 = arith.constant 0 : index
    %0 = vector.load %arg1[%c0, %c0_0] : memref<2x8xf32, #tpu.memory_space<vmem>>, vector<2x8xf32>
    %c0_1 = arith.constant 0 : index
    %c0_2 = arith.constant 0 : index
    %1 = vector.load %arg2[%c0_1, %c0_2] : memref<8x512xf32, #tpu.memory_space<vmem>>, vector<8x512xf32>
    %cst = arith.constant dense<0.000000e+00> : vector<2x512xf32>
    %2 = tpu.matmul %0, %1, %cst {dimension_numbers = #tpu.dot_dimension_numbers<[1], [0], [0], [1], [0, 0, 1, 1], [], []>} : vector<2x8xf32>, vector<8x512xf32>, vector<2x512xf32> -> vector<2x512xf32>
    %c0_3 = arith.constant 0 : index
    %c0_4 = arith.constant 0 : index
    %3 = vector.load %arg3[%c0_3, %c0_4] : memref<1x512xf32, #tpu.memory_space<vmem>>, vector<1x512xf32>
    %4 = vector.broadcast %3 : vector<1x512xf32> to vector<2x512xf32>
    %5 = arith.addf %2, %4 : vector<2x512xf32>
    %6 = vector.extract_strided_slice %5 {offsets = [0, 0], sizes = [2, 256], strides = [1, 1]} : vector<2x512xf32> to vector<2x256xf32>
    %7 = vector.extract_strided_slice %5 {offsets = [0, 256], sizes = [2, 256], strides = [1, 1]} : vector<2x512xf32> to vector<2x256xf32>
    %c0_5 = arith.constant 0 : index
    %c0_6 = arith.constant 0 : index
    %8 = vector.load %arg5[%c0_5, %c0_6] : memref<2x256xf32, #tpu.memory_space<vmem>>, vector<2x256xf32>
    %9 = arith.mulf %6, %8 : vector<2x256xf32>
    %c0_7 = arith.constant 0 : index
    %c0_8 = arith.constant 0 : index
    %10 = vector.load %arg6[%c0_7, %c0_8] : memref<2x256xf32, #tpu.memory_space<vmem>>, vector<2x256xf32>
    %11 = arith.mulf %7, %10 : vector<2x256xf32>
    %12 = arith.addf %9, %11 : vector<2x256xf32>
    %c0_9 = arith.constant 0 : index
    %c0_10 = arith.constant 0 : index
    %13 = vector.load %arg4[%c0_9, %c0_10] : memref<256x8xf32, #tpu.memory_space<vmem>>, vector<256x8xf32>
    %cst_11 = arith.constant dense<0.000000e+00> : vector<2x8xf32>
    %14 = tpu.matmul %12, %13, %cst_11 {dimension_numbers = #tpu.dot_dimension_numbers<[1], [0], [0], [1], [0, 0, 1, 1], [], []>} : vector<2x256xf32>, vector<256x8xf32>, vector<2x8xf32> -> vector<2x8xf32>
    %c0_12 = arith.constant 0 : index
    %c0_13 = arith.constant 0 : index
    %15 = vector.load %arg7[%c0_12, %c0_13] : memref<2x8xf32, #tpu.memory_space<vmem>>, vector<2x8xf32>
    tpu.vector_store %arg7[%c0_12, %c0_13], %14 {strides = array<i32>} : memref<2x8xf32, #tpu.memory_space<vmem>>, vector<2x8xf32>,
    return
  }
  func.func @transform_0(%arg0: i32) -> (i32, i32) {
    %c0_i32 = arith.constant 0 : i32
    %c0_i32_0 = arith.constant 0 : i32
    return %arg0, %c0_i32 : i32, i32
  }
  func.func @transform_1(%arg0: i32) -> (i32, i32) {
    %c0_i32 = arith.constant 0 : i32
    %c0_i32_0 = arith.constant 0 : i32
    %c0_i32_1 = arith.constant 0 : i32
    return %c0_i32, %c0_i32_0 : i32, i32
  }
  func.func @transform_2(%arg0: i32) -> (i32, i32) {
    %c0_i32 = arith.constant 0 : i32
    %c0_i32_0 = arith.constant 0 : i32
    %c0_i32_1 = arith.constant 0 : i32
    return %c0_i32, %c0_i32_0 : i32, i32
  }
  func.func @transform_3(%arg0: i32) -> (i32, i32) {
    %c0_i32 = arith.constant 0 : i32
    %c0_i32_0 = arith.constant 0 : i32
    %c0_i32_1 = arith.constant 0 : i32
    return %c0_i32, %c0_i32_0 : i32, i32
  }
  func.func @transform_4(%arg0: i32) -> (i32, i32) {
    %c0_i32 = arith.constant 0 : i32
    %c0_i32_0 = arith.constant 0 : i32
    return %arg0, %c0_i32 : i32, i32
  }
  func.func @transform_5(%arg0: i32) -> (i32, i32) {
    %c0_i32 = arith.constant 0 : i32
    %c0_i32_0 = arith.constant 0 : i32
    return %arg0, %c0_i32 : i32, i32
  }
  func.func @transform_6(%arg0: i32) -> (i32, i32) {
    %c0_i32 = arith.constant 0 : i32
    %c0_i32_0 = arith.constant 0 : i32
    return %arg0, %c0_i32 : i32, i32
  }
}

</mosaic_0001>

<bundles_post_ra>
// kernel: tpu_custom_call.1
= control target key start
LH: loop header
LB: loop body
LE: loop exit
PB: predicated region body
PF: predicated region fallthrough
CT: control target
= control target key end

     0   :  { %vm51_vm0 = vcmask 64512   ;;  %v408_v3 = vmov 0.0   ;;  %s570_s0 = inlined_call_operand.vmem [shape: f32[2,8], index: 0, kind: input, shape index: {}]   ;;  %s571_s1 = inlined_call_operand.vmem [shape: f32[8,512], index: 1, kind: input, shape index: {}]   ;;  %s572_s2 = inlined_call_operand.vmem [shape: f32[1,512], index: 2, kind: input, shape index: {}]   ;;  %s573_s3 = inlined_call_operand.vmem [shape: f32[256,8], index: 3, kind: input, shape index: {}]   ;;  %s574_s4 = inlined_call_operand.vmem [shape: f32[2,256], index: 4, kind: input, shape index: {}]   ;;  %s575_s5 = inlined_call_operand.vmem [shape: f32[2,256], index: 5, kind: input, shape index: {}]   ;;  %s576_s6 = inlined_call_operand.hbm [shape: f32[2,8], index: 6, kind: output, shape index: {}]  }
   0x1   :  { %v26_v0 = vld [vmem:[%s571_s1 + $0x8] sm:$0xff]  ;;  %v25_v1 = vld [vmem:[%s571_s1] sm:$0xff]  ;;  %119 = vmatprep.mubr.f32.mxu1 %v408_v3  ;;  %v28_v4 = vld [vmem:[%s571_s1 + $0x18] sm:$0xff] }
   0x2   :  { %v24_v2 = vld [vmem:[%s570_s0] sm:$0x3]  ;;  %85 = vmatprep.subr.mxu1 %v26_v0  ;;  %v27_v5 = vld [vmem:[%s571_s1 + $0x10] sm:$0xff]  ;;  %v258_v6 = vld [vmem:[%s573_s3 + $0xf8] sm:$0xff] }
   0x3   :  { %86 = vmatpush1.msra.mxu1 %v25_v1  ;;  %349 = vmatprep.subr.mxu0 %v258_v6  ;;  %v242_v7 = vld [vmem:[%s573_s3 + $0x78] sm:$0xff]  ;;  %v257_v8 = vld [vmem:[%s573_s3 + $0xf0] sm:$0xff]  ;;  %v256_v10 = vld [vmem:[%s573_s3 + $0xe8] sm:$0xff] }
   0x4   :  { %345 = vmatmul.mubr.msk.f32.vlgmr.msra.gmra.mxu1 %vm51_vm0, %v24_v2  ;;  %156 = vmatprep.subr.mxu1 %v28_v4  ;;  %v241_v9 = vld [vmem:[%s573_s3 + $0x70] sm:$0xff]  ;;  %v240_v11 = vld [vmem:[%s573_s3 + $0x68] sm:$0xff]  ;;  %v255_v12 = vld [vmem:[%s573_s3 + $0xe0] sm:$0xff] }
   0x5   :  { %157 = vmatpush1.msra.mxu1 %v27_v5  ;;  %190 = vmatprep.mubr.f32.mxu1 %v408_v3  ;;  %v239_v13 = vld [vmem:[%s573_s3 + $0x60] sm:$0xff] }
   0x6   :  { %350 = vmatpush3.msra.mxu0 %v242_v7 }
   0x7   :  { %351 = vmatprep.subr.mxu0 %v257_v8 }
   0x8   :  { %346 = vmatmul.mubr.msk.f32.vlgmr.msra.gmra.mxu1 %vm51_vm0, %v24_v2  ;;  %352 = vmatpush3.msra.mxu0 %v241_v9 }
   0x9   :  { %353 = vmatprep.subr.mxu0 %v256_v10 }
   0xa   :  { %11 = vsyncpa [#allocation3], 0  ;;  %354 = vmatpush3.msra.mxu0 %v240_v11  ;;  %v254_v14 = vld [vmem:[%s573_s3 + $0xd8] sm:$0xff]  ;;  %v253_v16 = vld [vmem:[%s573_s3 + $0xd0] sm:$0xff]  ;;  %v31_v38 = vlaneseq  ;;  %vm329_vm1 = vcmask 58368  }
   0xb   :  { %355 = vmatprep.subr.mxu0 %v255_v12  ;;  %v238_v15 = vld [vmem:[%s573_s3 + $0x58] sm:$0xff]  ;;  %v237_v17 = vld [vmem:[%s573_s3 + $0x50] sm:$0xff]  ;;  %v252_v18 = vld [vmem:[%s573_s3 + $0xc8] sm:$0xff] }
   0xc   :  { %356 = vmatpush3.msra.mxu0 %v239_v13  ;;  %v236_v19 = vld [vmem:[%s573_s3 + $0x48] sm:$0xff]  ;;  %v251_v20 = vld [vmem:[%s573_s3 + $0xc0] sm:$0xff]  ;;  %v250_v22 = vld [vmem:[%s573_s3 + $0xb8] sm:$0xff]  ;;  %v32_v39 = vshrl.u32 %v31_v38, 7 }
   0xd   :  { %357 = vmatprep.subr.mxu0 %v254_v14  ;;  %v235_v21 = vld [vmem:[%s573_s3 + $0x40] sm:$0xff]  ;;  %v234_v23 = vld [vmem:[%s573_s3 + $0x38] sm:$0xff]  ;;  %v249_v24 = vld [vmem:[%s573_s3 + $0xb0] sm:$0xff] }
   0xe   :  { %358 = vmatpush3.msra.mxu0 %v238_v15  ;;  %v233_v25 = vld [vmem:[%s573_s3 + $0x30] sm:$0xff]  ;;  %v248_v26 = vld [vmem:[%s573_s3 + $0xa8] sm:$0xff]  ;;  %v247_v28 = vld [vmem:[%s573_s3 + $0xa0] sm:$0xff]  ;;  %v37_v40 = vsub.s32 1, %v32_v39  ;;  %v41_v41 = vsub.s32 2, %v32_v39  ;;  %v33_v42 = vsub.s32 0, %v32_v39 }
   0xf   :  { %359 = vmatprep.subr.mxu0 %v253_v16  ;;  %v232_v27 = vld [vmem:[%s573_s3 + $0x28] sm:$0xff]  ;;  %v231_v29 = vld [vmem:[%s573_s3 + $0x20] sm:$0xff]  ;;  %v246_v30 = vld [vmem:[%s573_s3 + $0x98] sm:$0xff]  ;;  %v45_v44 = vsub.s32 3, %v32_v39 }
  0x10   :  { %360 = vmatpush3.msra.mxu0 %v237_v17  ;;  %v230_v31 = vld [vmem:[%s573_s3 + $0x18] sm:$0xff]  ;;  %v245_v32 = vld [vmem:[%s573_s3 + $0x90] sm:$0xff]  ;;  %v244_v34 = vld [vmem:[%s573_s3 + $0x88] sm:$0xff] }
  0x11   :  { %361 = vmatprep.subr.mxu0 %v252_v18  ;;  %v229_v33 = vld [vmem:[%s573_s3 + $0x10] sm:$0xff]  ;;  %v228_v35 = vld [vmem:[%s573_s3 + $0x8] sm:$0xff]  ;;  %v243_v36 = vld [vmem:[%s573_s3 + $0x80] sm:$0xff] }
  0x12   :  { %362 = vmatpush3.msra.mxu0 %v236_v19  ;;  %v227_v37 = vld [vmem:[%s573_s3] sm:$0xff] }
  0x13   :  { %363 = vmatprep.subr.mxu0 %v251_v20  ;;  %v29_v43 = vld [vmem:[%s572_s2] sm:$0xf]  ;;  %s409_s2 = smov [#allocation2]  }
  0x14   :  { %364 = vmatpush3.msra.mxu0 %v235_v21  ;;  %v347_v46 = vld.sshfl [vmem:[%s574_s4] sm:$0x33 pattern:$0x76325410]  ;;  %v38_v47 = vrot.slane %v29_v43, %v37_v40  ;;  %v42_v48 = vrot.slane %v29_v43, %v41_v41  ;;  %v34_v49 = vrot.slane %v29_v43, %v33_v42  ;;  %v46_v52 = vrot.slane %v29_v43, %v45_v44  ;;  %s337_s4 = sshll.u32 %s409_s2, 4  ;;  %s338_s4 = int_to_ptr.vmem [resolvable:$true] %s337_s4 }
  0x15   :  { %365 = vmatprep.subr.mxu0 %v250_v22  ;;  %v348_v51 = vld.sshfl [vmem:[%s575_s5] sm:$0x33 pattern:$0x76325410]  ;;  %v206_v56 = vcombine.high %v347_v46, %v347_v46  ;;  %s386_s5 = scalar_lea.vmem %s338_s4, 32  ;;  %p391_p1 = scmp.lt.s32.totalorder %s338_s4, %s338_s4 }
  0x16   :  { %366 = vmatpush3.msra.mxu0 %v234_v23  ;;  %v220_v57 = vcombine.high %v348_v51, %v348_v51  ;;  %p387_p0 = scmp.ne.s32.totalorder %s338_s4, %s386_s5  ;;  %p392_p2 = scmp.lt.s32.totalorder %s386_s5, %s386_s5 }
  0x17   :  { %367 = vmatprep.subr.mxu0 %v249_v24 }
  0x18   :  { %368 = vmatpush3.msra.mxu0 %v233_v25  ;;  %p393_p3 = por %p392_p2, %p391_p1 }
  0x19   :  { %369 = vmatprep.subr.mxu0 %v248_v26 }
  0x1a   :  { %370 = vmatpush3.msra.mxu0 %v232_v27  ;;  %p394_p4 = pnand %p393_p3, %p387_p0 }
  0x1b   :  { %371 = vmatprep.subr.mxu0 %v247_v28 }
  0x1c   :  { %372 = vmatpush3.msra.mxu0 %v231_v29 }
  0x1d   :  { %373 = vmatprep.subr.mxu0 %v246_v30 }
  0x1e   :  { %374 = vmatpush3.msra.mxu0 %v230_v31 }
  0x1f   :  { %375 = vmatprep.subr.mxu0 %v245_v32 }
  0x20   :  { %376 = vmatpush3.msra.mxu0 %v229_v33 }
  0x21   :  { %377 = vmatprep.subr.mxu0 %v244_v34 }
  0x22   :  { %378 = vmatpush3.msra.mxu0 %v228_v35 }
  0x23   :  { %379 = vmatprep.subr.mxu0 %v243_v36 }
  0x24   :  { %380 = vmatpush3.msra.mxu0 %v227_v37 }
  0xc4   :  { %v121_v45 = vpop.f32.mrf.mxu1 }
  0xc5   :  { %v122_v58 = vadd.f32 %v121_v45, %v34_v49 }
  0xc6   :  { %v123_v50 = vpop.f32.mrf.mxu1 }
  0xc7   :  { %v124_v54 = vadd.f32 %v123_v50, %v38_v47  ;;  %v209_v0 = vmul.f32 %v347_v46, %v122_v58 }
  0xc8   :  { %v192_v53 = vpop.f32.mrf.mxu1 }
  0xc9   :  { %v193_v55 = vadd.f32 %v192_v53, %v42_v48  ;;  %v210_v62 = vmul.f32 %v206_v56, %v124_v54 }
  0xca   :  { %v194_v59 = vpop.f32.mrf.mxu1 }
  0xcb   :  { %v195_v60 = vadd.f32 %v194_v59, %v46_v52  ;;  %v223_v61 = vmul.f32 %v348_v51, %v193_v55 }
  0xcd   :  { %v224_v63 = vmul.f32 %v220_v57, %v195_v60  ;;  %v225_v2 = vadd.f32 %v223_v61, %v209_v0 }
  0xcf   :  { %v226_v1 = vadd.f32 %v224_v63, %v210_v62 }
  0xd1   :  { %323 = vmatprep.mubr.f32.mxu0 %v226_v1 }
  0xd2   :  { %324 = vmatmul.mubr.f32.vlgmr.msra.gmra.mxu0 %v225_v2 }
 0x192   :  { %v381_v3 = vpop.f32.mrf.mxu0 }
 0x194   :  { %v382_v4 = vpop.f32.mrf.mxu0 }
 0x195   :  { %v383_v5 = vadd.f32 %v382_v4, %v381_v3 }
 0x197   :  { %330 = vst.msk [vmem:[#allocation2] sm:$0x3] %vm329_vm1, %v383_v5 }
 0x198   :  { %397 = shalt.err (!%p394_p4)
}
 0x199   :  { %340 = dma.vmem_to_hbm [thread:$0]  %s338_s4, 32, %s576_s6, [#allocation3]  }
 0x19a   :  { %406 = dma.done.wait [#allocation3], 32  }
 0x19b   :  { %407 = vsyncadd [#allocation3], 4294967264 }
 0x19c   :  { %344 = vsyncpa [#allocation3], 1 }

</bundles_post_ra>
